<compile_context>
chip_gen: v7x
topology: tpu7x:2x2x1
jax: 0.10.0
libtpu: 0.0.40
codegen_flags: <defaults>
</compile_context>

<pallas_src>
import functools

import jax
import jax.numpy as jnp
from jax.experimental import pallas as pl
from jax.experimental.pallas import tpu as pltpu

_LANE = 128
_SUBLANE = 8
_N_QUAT, _N_SCALE, _N_TRANS = 4, 1, 2        # column layout of the "small" block
_SMALL_PAD = _LANE                            # small heads padded to one lane group


def _round_up(x, m):
    return (x + m - 1) // m * m


def _default_n_tiles():
    """2-way parallel N grid on v7x (2 TensorCores/chip); 1 tile elsewhere."""
    try:
        kind = jax.devices()[0].device_kind.lower()
    except Exception:
        return 1
    return 2 if "7" in kind else 1


def code_predictor_kernel(feat_ref, w_ref, b_ref, out_ref):
    # Cast activations to the (bf16) weight dtype; accumulation stays f32.
    feat = feat_ref[...].astype(w_ref.dtype)                     # (b_pad, k_pad)

    # Fused matmul for all heads, written straight to the output block so the
    # full-width result is never held live across the epilogue.
    out_ref[...] = (
        jnp.dot(feat, w_ref[...], preferred_element_type=jnp.float32) + b_ref[...]
    )

    # Epilogue touches only the first 128 lanes (quat | scale | trans | pad),
    # which live entirely in grid tile 0.
    @pl.when(pl.program_id(0) == 0)
    def _():
        small = out_ref[:, pl.ds(0, _SMALL_PAD)]                 # (b_pad, 128)
        col = jax.lax.broadcasted_iota(jnp.int32, small.shape, 1)

        # QuatPredictor: F.normalize(q) == q / max(||q||_2, 1e-12)
        q_sq = jnp.where(col < _N_QUAT, small * small, 0.0)
        sumsq = jnp.sum(q_sq, axis=-1, keepdims=True)
        inv_norm = jax.lax.rsqrt(jnp.maximum(sumsq, 1e-24))      # == 1/max(||q||,1e-12)
        quat_val = small * inv_norm

        # ScalePredictor: relu(x + 1) + 1e-12  ('+1' already folded into bias)
        scale_val = jnp.maximum(small, 0.0) + 1e-12

        out_ref[:, pl.ds(0, _SMALL_PAD)] = jnp.where(
            col < _N_QUAT, quat_val,
            jnp.where(col == _N_QUAT, scale_val, small))


def fuse_params(params, weight_dtype=jnp.bfloat16, n_tiles=None):
    """Concatenate the four heads into one lane-padded weight/bias (done once).

    Weight is cast to `weight_dtype` (bf16 by default) to halve the dominant
    HBM->VMEM stream; bias stays f32.  K is zero-padded to a sublane multiple.
    """
    if n_tiles is None:
        n_tiles = _default_n_tiles()

    nz_feat = params["w_quat"].shape[0]
    num_verts3 = params["w_shape"].shape[1]

    k_pad = _round_up(nz_feat, _SUBLANE)
    shape_pad = _round_up(num_verts3, _LANE)
    tile_n = _round_up(-(-(_SMALL_PAD + shape_pad) // n_tiles), _LANE)
    n_pad = n_tiles * tile_n

    w = jnp.zeros((k_pad, n_pad), jnp.float32)
    b = jnp.zeros((1, n_pad), jnp.float32)

    w = w.at[:nz_feat, 0:_N_QUAT].set(params["w_quat"])
    w = w.at[:nz_feat, _N_QUAT:_N_QUAT + _N_SCALE].set(params["w_scale"])
    w = w.at[:nz_feat, _N_QUAT + _N_SCALE:_N_QUAT + _N_SCALE + _N_TRANS].set(params["w_trans"])
    w = w.at[:nz_feat, _SMALL_PAD:_SMALL_PAD + num_verts3].set(params["w_shape"])

    b = b.at[:, 0:_N_QUAT].set(params["b_quat"])
    b = b.at[:, _N_QUAT:_N_QUAT + _N_SCALE].set(params["b_scale"] + 1.0)   # fold '+1'
    b = b.at[:, _N_QUAT + _N_SCALE:_N_QUAT + _N_SCALE + _N_TRANS].set(params["b_trans"])
    b = b.at[:, _SMALL_PAD:_SMALL_PAD + num_verts3].set(params["b_shape"])

    # TODO(synk): the bf16 cast halves the dominant weight DMA; the
    # ShapePredictor weights (~N(0,1e-4)) keep only ~0.4% relative accuracy in
    # bf16 -- pass weight_dtype=jnp.float32 if that ever matters downstream.
    return w.astype(weight_dtype), b, num_verts3 // 3, n_tiles


@functools.partial(jax.jit, static_argnames=("num_verts", "n_tiles"))
def code_predictor_forward(feat, w_fused, b_fused, num_verts, n_tiles=1):
    """feat: (B, nz_feat) f32. Returns (shape_pred, scale_pred, trans_pred, quat_pred)."""
    B, nz_feat = feat.shape
    k_pad, n_pad = w_fused.shape
    tile_n = n_pad // n_tiles

    # Pad batch to the 8-row sublane granularity and K to the fused weight's
    # padded K (zero rows/cols; padded rows sliced off below).
    b_pad = _round_up(max(B, _SUBLANE), _SUBLANE)
    feat_p = jnp.pad(feat, ((0, b_pad - B), (0, k_pad - nz_feat)))

    cost = pl.CostEstimate(
        flops=2 * b_pad * k_pad * n_pad,
        transcendentals=b_pad,
        bytes_accessed=(4 * b_pad * k_pad
                        + w_fused.dtype.itemsize * k_pad * n_pad
                        + 4 * n_pad
                        + 4 * b_pad * n_pad),
    )

    # TODO(synk): once k_pad * n_pad * itemsize grows past ~20-24 MiB, raise
    # n_tiles (v7x has only 64 MiB physical / 32 MiB default-scoped VMEM) and
    # set pltpu.CompilerParams(vmem_limit_bytes=...) explicitly.
    # TODO(synk): for large production batches add a "parallel" M grid axis
    # (128/256-row tiles) instead of one monolithic (b_pad, n_pad) block.
    # TODO(synk): if this head runs every step with fixed weights, keep w_fused
    # VMEM-resident across calls (fuse into the upstream encoder kernel, or use
    # the cross-pallas_call semaphore/VMEM-ref prefetch pattern) instead of
    # re-streaming it from HBM each call.
    out = pl.pallas_call(
        code_predictor_kernel,
        out_shape=jax.ShapeDtypeStruct((b_pad, n_pad), jnp.float32),
        grid=(n_tiles,),
        in_specs=[
            pl.BlockSpec((b_pad, k_pad), lambda j: (0, 0)),    # feat, resident
            pl.BlockSpec((k_pad, tile_n), lambda j: (0, j)),   # fused-weight N tile
            pl.BlockSpec((1, tile_n), lambda j: (0, j)),       # fused-bias N tile
        ],
        out_specs=pl.BlockSpec((b_pad, tile_n), lambda j: (0, j)),
        compiler_params=pltpu.CompilerParams(dimension_semantics=("parallel",)),
        cost_estimate=cost,
    )(feat_p, w_fused, b_fused)

    quat_pred = out[:B, 0:_N_QUAT]
    scale_pred = out[:B, _N_QUAT:_N_QUAT + _N_SCALE]
    trans_pred = out[:B, _N_QUAT + _N_SCALE:_N_QUAT + _N_SCALE + _N_TRANS]
    shape_pred = out[:B, _SMALL_PAD:_SMALL_PAD + num_verts * 3].reshape(B, num_verts, 3)
    return shape_pred, scale_pred, trans_pred, quat_pred


def code_predictor_reference(feat, params):
    """Pure-JAX f32 reference matching the PyTorch module semantics."""
    B = feat.shape[0]
    shape = (feat @ params["w_shape"] + params["b_shape"]).reshape(B, -1, 3)
    scale = jnp.maximum(feat @ params["w_scale"] + params["b_scale"] + 1.0, 0.0) + 1e-12
    quat = feat @ params["w_quat"] + params["b_quat"]
    quat = quat / jnp.maximum(jnp.linalg.norm(quat, axis=-1, keepdims=True), 1e-12)
    trans = feat @ params["w_trans"] + params["b_trans"]
    return shape, scale, trans, quat


def init_params(key, nz_feat, num_verts):
    """Deterministic synthetic parameters matching the PyTorch module shapes."""
    ks = jax.random.split(key, 8)

    def linear_init(kw, kb, fan_in, fan_out):
        bound = 1.0 / jnp.sqrt(jnp.float32(fan_in))
        w = jax.random.uniform(kw, (fan_in, fan_out), jnp.float32, -bound, bound)
        b = jax.random.uniform(kb, (1, fan_out), jnp.float32, -bound, bound)
        return w, b

    # ShapePredictor: weights ~ N(0, 1e-4), bias default Linear init.
    w_shape = 1e-4 * jax.random.normal(ks[0], (nz_feat, num_verts * 3), jnp.float32)
    bound = 1.0 / jnp.sqrt(jnp.float32(nz_feat))
    b_shape = jax.random.uniform(ks[1], (1, num_verts * 3), jnp.float32, -bound, bound)

    w_scale, b_scale = linear_init(ks[2], ks[3], nz_feat, 1)
    w_quat, b_quat = linear_init(ks[4], ks[5], nz_feat, 4)
    w_trans, b_trans = linear_init(ks[6], ks[7], nz_feat, 2)

    return dict(
        w_shape=w_shape, b_shape=b_shape,
        w_scale=w_scale, b_scale=b_scale,
        w_quat=w_quat, b_quat=b_quat,
        w_trans=w_trans, b_trans=b_trans,
    )


if __name__ == "__main__":
    B, NZ_FEAT, NUM_VERTS = 2, 32, 16

    key = jax.random.PRNGKey(0)
    k_feat, k_params = jax.random.split(key)
    feat = jax.random.normal(k_feat, (B, NZ_FEAT), jnp.float32)
    params = init_params(k_params, NZ_FEAT, NUM_VERTS)

    # Parameter fusion + bf16 cast happens once (init-time), not per forward call.
    w_fused, b_fused, num_verts, n_tiles = fuse_params(params)

    outs = jax.block_until_ready(
        code_predictor_forward(feat, w_fused, b_fused, num_verts, n_tiles)
    )
    shape_pred, scale_pred, trans_pred, quat_pred = outs

    assert shape_pred.shape == (B, NUM_VERTS, 3)
    assert scale_pred.shape == (B, 1)
    assert trans_pred.shape == (B, 2)
    assert quat_pred.shape == (B, 4)

    # Sanity: quaternions are unit-norm, scale is strictly positive.
    assert bool(jnp.all(jnp.abs(jnp.linalg.norm(quat_pred, axis=-1) - 1.0) < 1e-5))
    assert bool(jnp.all(scale_pred > 0.0))

    # Numerical parity with the pure-JAX f32 reference (loose tolerance: the
    # fused weight is streamed in bf16; bias/activations/accumulation are f32).
    refs = code_predictor_reference(feat, params)
    for got, want in zip(outs, refs):
        assert bool(jnp.allclose(got, want, rtol=5e-2, atol=5e-2))

    print("KERNEL_OK")
</pallas_src>

<mosaic_0001>
module attributes {stable_mosaic.version = 11 : i64} {
  func.func @code_predictor_kernel(%arg0: i32, %arg1: memref<8x32xf32, #tpu.memory_space<vmem>>, %arg2: memref<32x256xbf16, #tpu.memory_space<vmem>>, %arg3: memref<1x256xf32, #tpu.memory_space<vmem>>, %arg4: memref<8x256xf32, #tpu.memory_space<vmem>>) attributes {dimension_semantics = [#tpu.dimension_semantics<parallel>], iteration_bounds = array<i64: 1>, scalar_prefetch = 0 : i64, scratch_operands = 0 : i64, tpu.core_type = #tpu.core_type<tc>, window_params = [{pipeline_mode = #tpu.pipeline_mode<synchronous>, transform_indices = @transform_0, window_bounds = array<i64: 8, 32>}, {transform_indices = @transform_1, window_bounds = array<i64: 32, 256>}, {transform_indices = @transform_2, window_bounds = array<i64: 1, 256>}, {transform_indices = @transform_3, window_bounds = array<i64: 8, 256>}]} {
    %c0 = arith.constant 0 : index
    %c0_0 = arith.constant 0 : index
    %0 = vector.load %arg1[%c0, %c0_0] : memref<8x32xf32, #tpu.memory_space<vmem>>, vector<8x32xf32>
    %1 = arith.truncf %0 : vector<8x32xf32> to vector<8x32xbf16>
    %c0_1 = arith.constant 0 : index
    %c0_2 = arith.constant 0 : index
    %2 = vector.load %arg2[%c0_1, %c0_2] : memref<32x256xbf16, #tpu.memory_space<vmem>>, vector<32x256xbf16>
    %cst = arith.constant dense<0.000000e+00> : vector<8x256xf32>
    %3 = tpu.matmul %1, %2, %cst {dimension_numbers = #tpu.dot_dimension_numbers<[1], [0], [0], [1], [0, 0, 1, 1], [], []>} : vector<8x32xbf16>, vector<32x256xbf16>, vector<8x256xf32> -> vector<8x256xf32>
    %c0_3 = arith.constant 0 : index
    %c0_4 = arith.constant 0 : index
    %4 = vector.load %arg3[%c0_3, %c0_4] : memref<1x256xf32, #tpu.memory_space<vmem>>, vector<1x256xf32>
    %5 = vector.broadcast %4 : vector<1x256xf32> to vector<8x256xf32>
    %6 = arith.addf %3, %5 : vector<8x256xf32>
    %c0_5 = arith.constant 0 : index
    %c0_6 = arith.constant 0 : index
    %7 = vector.load %arg4[%c0_5, %c0_6] : memref<8x256xf32, #tpu.memory_space<vmem>>, vector<8x256xf32>
    tpu.vector_store %arg4[%c0_5, %c0_6], %6 {strides = array<i32>} : memref<8x256xf32, #tpu.memory_space<vmem>>, vector<8x256xf32>,
    %c0_i32 = arith.constant 0 : i32
    %8 = arith.cmpi eq, %arg0, %c0_i32 : i32
    %9 = arith.extui %8 : i1 to i32
    %c0_i32_7 = arith.constant 0 : i32
    %10 = arith.cmpi ne, %9, %c0_i32_7 : i32
    scf.if %10 {
      %c0_8 = arith.constant 0 : index
      %c0_9 = arith.constant 0 : index
      %11 = vector.load %arg4[%c0_8, %c0_9] : memref<8x256xf32, #tpu.memory_space<vmem>>, vector<8x128xf32>
      %12 = tpu.iota {dimensions = array<i32: 1>} : vector<8x128xi32>
      %c4_i32 = arith.constant 4 : i32
      %13 = vector.broadcast %c4_i32 : i32 to vector<8x128xi32>
      %14 = arith.cmpi slt, %12, %13 : vector<8x128xi32>
      %15 = arith.mulf %11, %11 : vector<8x128xf32>
      %cst_10 = arith.constant 0.000000e+00 : f32
      %16 = vector.broadcast %cst_10 : f32 to vector<8x128xf32>
      %17 = arith.select %14, %15, %16 : vector<8x128xi1>, vector<8x128xf32>
      %cst_11 = arith.constant dense<0.000000e+00> : vector<8xf32>
      %18 = vector.multi_reduction <add>, %17, %cst_11 [1] : vector<8x128xf32> to vector<8xf32>
      %19 = vector.shape_cast %18 : vector<8xf32> to vector<8x1xf32>
      %cst_12 = arith.constant 1.000000e-24 : f32
      %20 = vector.broadcast %cst_12 : f32 to vector<8x1xf32>
      %21 = arith.maximumf %19, %20 : vector<8x1xf32>
      %22 = math.rsqrt %21 : vector<8x1xf32>
      %23 = vector.broadcast %22 : vector<8x1xf32> to vector<8x128xf32>
      %24 = arith.mulf %11, %23 : vector<8x128xf32>
      %cst_13 = arith.constant 0.000000e+00 : f32
      %25 = vector.broadcast %cst_13 : f32 to vector<8x128xf32>
      %26 = arith.maximumf %11, %25 : vector<8x128xf32>
      %cst_14 = arith.constant 9.99999996E-13 : f32
      %27 = vector.broadcast %cst_14 : f32 to vector<8x128xf32>
      %28 = arith.addf %26, %27 : vector<8x128xf32>
      %c4_i32_15 = arith.constant 4 : i32
      %29 = vector.broadcast %c4_i32_15 : i32 to vector<8x128xi32>
      %30 = arith.cmpi slt, %12, %29 : vector<8x128xi32>
      %c4_i32_16 = arith.constant 4 : i32
      %31 = vector.broadcast %c4_i32_16 : i32 to vector<8x128xi32>
      %32 = arith.cmpi eq, %12, %31 : vector<8x128xi32>
      %33 = arith.select %32, %28, %11 : vector<8x128xi1>, vector<8x128xf32>
      %34 = arith.select %30, %24, %33 : vector<8x128xi1>, vector<8x128xf32>
      %c0_17 = arith.constant 0 : index
      %c0_18 = arith.constant 0 : index
      %35 = vector.load %arg4[%c0_17, %c0_18] : memref<8x256xf32, #tpu.memory_space<vmem>>, vector<8x128xf32>
      tpu.vector_store %arg4[%c0_17, %c0_18], %34 {strides = array<i32>} : memref<8x256xf32, #tpu.memory_space<vmem>>, vector<8x128xf32>,
    } else {
    }
    return
  }
  func.func @transform_0(%arg0: i32) -> (i32, i32) {
    %c0_i32 = arith.constant 0 : i32
    %c0_i32_0 = arith.constant 0 : i32
    %c0_i32_1 = arith.constant 0 : i32
    return %c0_i32, %c0_i32_0 : i32, i32
  }
  func.func @transform_1(%arg0: i32) -> (i32, i32) {
    %c0_i32 = arith.constant 0 : i32
    %c0_i32_0 = arith.constant 0 : i32
    return %c0_i32, %arg0 : i32, i32
  }
  func.func @transform_2(%arg0: i32) -> (i32, i32) {
    %c0_i32 = arith.constant 0 : i32
    %c0_i32_0 = arith.constant 0 : i32
    return %c0_i32, %arg0 : i32, i32
  }
  func.func @transform_3(%arg0: i32) -> (i32, i32) {
    %c0_i32 = arith.constant 0 : i32
    %c0_i32_0 = arith.constant 0 : i32
    return %c0_i32, %arg0 : i32, i32
  }
}

</mosaic_0001>

<bundles_post_ra>
// kernel: code_predictor_forward.1
= control target key start
LH: loop header
LB: loop body
LE: loop exit
PB: predicated region body
PF: predicated region fallthrough
CT: control target
= control target key end

     0   :  { %8 = vsyncpa [#allocation3], 0  ;;  %s181_s12 = smov [#allocation2]   ;;  %s229_s0 = inlined_call_operand.vmem [shape: f32[8,32], index: 0, kind: input, shape index: {}]   ;;  %s230_s1 = inlined_call_operand.hbm [shape: bf16[32,256], index: 1, kind: input, shape index: {}]   ;;  %s231_s2 = inlined_call_operand.vmem [shape: f32[1,256], index: 2, kind: input, shape index: {}]   ;;  %s232_s3 = inlined_call_operand.vmem [shape: f32[8,256], index: 3, kind: output, shape index: {}]  }
   0x1   :  { %s16_s13 = sshll.u32 %s181_s12, 4  ;;  %s157_s16 = scalar_lea.hbm %s230_s1, 512  ;;  %s17_s13 = int_to_ptr.vmem [resolvable:$true] %s16_s13 }
   0x2   :  { %p158_p0 = scmp.ne.s32.totalorder %s230_s1, %s157_s16  ;;  %p161_p1 = scmp.lt.u32.totalorder %s157_s16, %s230_s1 }
   0x4   :  { %p163_p2 = pnand %p161_p1, %p158_p0 }
   0x6   :  { %166 = shalt.err (!%p163_p2)
}
   0x7   :  { %s167_s21 = scalar_lea.vmem %s17_s13, 512  ;;  %p172_p4 = scmp.lt.s32.totalorder %s17_s13, %s17_s13 }
   0x8   :  { %p168_p3 = scmp.ne.s32.totalorder %s17_s13, %s167_s21  ;;  %p173_p5 = scmp.lt.s32.totalorder %s167_s21, %s167_s21 }
   0xa   :  { %p174_p6 = por %p173_p5, %p172_p4 }
   0xc   :  { %p175_p7 = pnand %p174_p6, %p168_p3 }
   0xe   :  { %178 = shalt.err (!%p175_p7)
}
   0xf   :  { %s182_s22 = smov 128   ;;  %s183_s23 = smov 8  }
  0x10   :  { %22 = dma.hbm_to_vmem [thread:$0]  %s230_s1, 512, %s17_s13, [#allocation3], %s182_s22, %s182_s22, %s183_s23  }
  0x11   :  { %179 = dma.done.wait [#allocation3], 512  }
  0x12   :  { %180 = vsyncadd [#allocation3], 4294966784  ;;  %v184_v0 = vmov 0   ;;  %v149_v1 = vld [vmem:[#allocation2 + $0x4] ss:$8 sps:$4 sm:$0xff]   ;;  %vm67_vm0 = vcmask 261120   ;;  %v37_v7 = vlaneseq }
  0x13   :  { %103 = vmatprep.mubr.bf16.mxu0 %v184_v0  ;;  %v151_v2 = vld [vmem:[#allocation2] ss:$8 sps:$4 sm:$0xff]   ;;  %71 = vmatprep.subr.bf16.mxu0 %v149_v1  ;;  %v152_v3 = vld [vmem:[#allocation2 + $0x14] ss:$8 sps:$4 sm:$0xff]   ;;  %v154_v4 = vld [vmem:[#allocation2 + $0x10] ss:$8 sps:$4 sm:$0xff]  }
  0x14   :  { %72 = vmatpush1.bf16.msra.mxu0 %v151_v2  ;;  %v29_v5 = vld [vmem:[%s229_s0] sm:$0xff]  ;;  %v38_v8 = vshrl.u32 %v37_v7, 7  ;;  %v120_v14 = vand.u32 127, %v37_v7 }
  0x15   :  { %73 = vmatprep.subr.bf16.mxu0 %v152_v3  ;;  %v30_v6 = vpack.c.bf16 %v29_v5, %v29_v5  ;;  %v35_v10 = vld [vmem:[%s231_s2] sm:$0x3] }
  0x16   :  { %v39_v9 = vsub.s32 0, %v38_v8  ;;  %v43_v11 = vsub.s32 1, %v38_v8  ;;  %vm121_vm1 = vcmp.lt.s32.totalorder %v120_v14, 4  ;;  %vm131_vm2 = vcmp.eq.s32.totalorder %v120_v14, 4 }
  0x18   :  { %74 = vmatpush1.bf16.msra.mxu0 %v154_v4  ;;  %v40_v12 = vrot.slane %v35_v10, %v39_v9  ;;  %v44_v13 = vrot.slane %v35_v10, %v43_v11 }
  0x1b   :  { %144 = vmatmul.mubr.msk.bf16.vlgmr.msra.gmra.mrb[0].mxu0 %vm67_vm0, %v30_v6 }
  0xee   :  { %v105_v15 = vpop.f32.mrb[0].mxu0 }
  0xef   :  { %v106_v16 = vadd.f32 %v105_v15, %v40_v12  ;;  %v107_v17 = vpop.f32.mrb[1].mxu0 }
  0xf0   :  { %v108_v18 = vadd.f32 %v107_v17, %v44_v13  ;;  %v109_v19 = vpop.f32.mrb[2].mxu0 }
  0xf1   :  { %v110_v20 = vpop.f32.mrb[3].mxu0  ;;  %v122_v21 = vmul.f32 %v106_v16, %v106_v16  ;;  %v129_v25 = vmax.f32 %v106_v16, 0.0 }
  0xf2   :  { %113 = vst [vmem:[%s232_s3 + $0x8] sm:$0xff] %v108_v18 }
  0xf3   :  { %v123_v22 = vsel %vm121_vm1, %v122_v21, 0.0  ;;  %v130_v26 = vadd.f32 1e-12, %v129_v25 }
  0xf4   :  { %124 = vadd.xlane.f32.xlu0 %v123_v22 }
  0xf5   :  { %v132_v29 = vsel %vm131_vm2, %v130_v26, %v106_v16 }
 0x181   :  { %v125_v23 = vpop.xlane.xlu0 %124 }
 0x182   :  { %v126_v24 = vmax.f32 %v125_v23, 1e-24 }
 0x184   :  { %155 = vrsqrt.f32 %v126_v24 }
 0x18e   :  { %v156_v27 = vpop.eup %155 }
 0x18f   :  { %v128_v28 = vmul.f32 %v156_v27, %v106_v16 }
 0x191   :  { %v133_v30 = vsel %vm121_vm1, %v128_v28, %v132_v29 }
 0x192   :  { %134 = vst [vmem:[%s232_s3] sm:$0xff] %v133_v30 }
 0x193   :  { %139 = vsyncpa [#allocation3], 1 }

</bundles_post_ra>
